<compile_context>
chip_gen: v6e
topology: v6e:2x2x1
jax: 0.10.0
libtpu: 0.0.40
codegen_flags: <defaults>
</compile_context>

<pallas_src>
import jax
import jax.numpy as jnp
from jax import lax
from jax.experimental import pallas as pl
from jax.experimental.pallas import tpu as pltpu


def _mask_mlp_kernel(x_ref, w_ref, b_ref, o_ref):
    # x_ref: (C, TS)  channel-major activation tile (transpose fused here)
    # w_ref: (C, D)   full weight, resident in VMEM (constant index_map)
    # b_ref: (1, D)   bias row
    # o_ref: (TS, D)  output tile
    acc = lax.dot_general(
        x_ref[...],
        w_ref[...],
        dimension_numbers=(((0,), (0,)), ((), ())),   # contract C: x^T @ w -> (TS, D)
        preferred_element_type=jnp.float32,
    )
    acc = acc + b_ref[...].astype(jnp.float32)         # bias add in f32
    o_ref[...] = acc.astype(o_ref.dtype)


def _round_up(x: int, m: int) -> int:
    return ((x + m - 1) // m) * m


def _pick_tile_s(S, B, C, D, itemsize, vmem_budget_bytes):
    """Largest 128-multiple spatial tile that fits the double-buffered budget."""
    # Per-step pipelined VMEM: 2 x (x tile C*tile_s) + 2 x (out tile tile_s*D)
    # plus the resident (double-buffered) weight/bias.
    fixed = 2 * (C * D + D) * itemsize
    tile = min(2048, _round_up(S, 128))
    tile = max(128, (tile // 128) * 128)
    while tile > 128 and fixed + 2 * tile * (C + D) * itemsize > vmem_budget_bytes:
        tile = max(128, ((tile // 2) // 128) * 128)
    # Keep >= 2 grid steps when the problem allows (2 TensorCores on v7x).
    while tile > 128 and B * ((S + tile - 1) // tile) < 2:
        tile = max(128, ((tile // 2) // 128) * 128)
    return tile


def segformer_mask_mlp(hidden_states, weight, bias, *, tile_s=None):
    """Pallas forward of SegformerForMaskMLP.

    hidden_states: (B, C, H, W)  NCHW feature map (f32 or bf16)
    weight:        (C, D)        == torch nn.Linear(C, D).weight.T
                                    (transpose once at load time, not per call)
    bias:          (D,)
    returns:       (B, H*W, D)
    """
    B, C, H, W = hidden_states.shape
    C_w, D = weight.shape
    assert C_w == C, (C_w, C)
    S = H * W
    out_dtype = hidden_states.dtype
    itemsize = jnp.dtype(hidden_states.dtype).itemsize

    if tile_s is None:
        tile_s = _pick_tile_s(S, B, C, D, itemsize,
                              vmem_budget_bytes=24 * 1024 * 1024)

    n_s = pl.cdiv(S, tile_s)
    S_pad = n_s * tile_s

    # Free reshape: NCHW -> (B, C, S).  The HW->token transpose happens inside
    # the kernel via the transposed contraction, not as a separate XLA pass.
    x = hidden_states.reshape(B, C, S)
    if S_pad != S:  # static check; pads only when S does not tile evenly
        x = jnp.pad(x, ((0, 0), (0, 0), (0, S_pad - S)))
    b2d = bias.reshape(1, D)

    flops = 2 * B * S_pad * C * D
    bytes_accessed = (B * S_pad * C + B * S_pad * D + C * D + D) * itemsize

    out = pl.pallas_call(
        _mask_mlp_kernel,
        out_shape=jax.ShapeDtypeStruct((B, S_pad, D), out_dtype),
        grid_spec=pltpu.PrefetchScalarGridSpec(
            num_scalar_prefetch=0,
            grid=(B, n_s),
            in_specs=[
                # Activation tile (C, tile_s): spatial axis on the 128 lanes.
                pl.BlockSpec((pl.Squeezed(), C, tile_s), lambda b, s: (b, 0, s)),
                # Grid-invariant weight / bias: constant index_map => single DMA,
                # never re-fetched across grid steps.
                pl.BlockSpec((C, D), lambda b, s: (0, 0)),
                pl.BlockSpec((1, D), lambda b, s: (0, 0)),
            ],
            out_specs=pl.BlockSpec((pl.Squeezed(), tile_s, D),
                                   lambda b, s: (b, s, 0)),
        ),
        compiler_params=pltpu.CompilerParams(
            dimension_semantics=("parallel", "parallel"),
            vmem_limit_bytes=48 * 1024 * 1024,
        ),
        cost_estimate=pl.CostEstimate(
            flops=flops, transcendentals=0, bytes_accessed=bytes_accessed),
    )(x, weight, b2d)

    if S_pad != S:
        out = out[:, :S, :]
    return out


def reference(hidden_states, weight, bias):
    B, C, H, W = hidden_states.shape
    x = hidden_states.reshape(B, C, H * W).transpose(0, 2, 1)
    return x @ weight + bias


if __name__ == "__main__":
    key = jax.random.PRNGKey(0)
    k_x, k_w, k_b = jax.random.split(key, 3)

    # Small shapes consistent with the module: batch=2, input_dim(C)=4,
    # spatial 16x16, output_dim(D)=32.
    B, C, H, W = 2, 4, 16, 16
    D = 32

    hidden_states = jax.random.normal(k_x, (B, C, H, W), dtype=jnp.float32)
    # torch nn.Linear(C, D).weight is stored (D, C); transpose ONCE at load
    # time (outside the hot path) to the kernel's (C, D) layout.
    weight_torch_layout = jax.random.normal(k_w, (D, C), dtype=jnp.float32) * 0.05
    weight = weight_torch_layout.T
    bias = jax.random.normal(k_b, (D,), dtype=jnp.float32) * 0.05

    fn = jax.jit(segformer_mask_mlp)
    out = jax.block_until_ready(fn(hidden_states, weight, bias))

    ref = reference(hidden_states, weight, bias)
    assert out.shape == (B, H * W, D), out.shape
    assert jnp.allclose(out, ref, atol=1e-5, rtol=1e-5), "mismatch vs reference"

    print("KERNEL_OK")
</pallas_src>

<mosaic_0001>
module attributes {stable_mosaic.version = 11 : i64} {
  func.func @_mask_mlp_kernel(%arg0: i32, %arg1: i32, %arg2: memref<1x4x256xf32, #tpu.memory_space<vmem>>, %arg3: memref<4x32xf32, #tpu.memory_space<vmem>>, %arg4: memref<1x32xf32, #tpu.memory_space<vmem>>, %arg5: memref<1x256x32xf32, #tpu.memory_space<vmem>>) attributes {dimension_semantics = [#tpu.dimension_semantics<parallel>, #tpu.dimension_semantics<parallel>], iteration_bounds = array<i64: 2, 1>, scalar_prefetch = 0 : i64, scratch_operands = 0 : i64, tpu.core_type = #tpu.core_type<tc>, window_params = [{transform_indices = @transform_0, window_bounds = array<i64: 1, 4, 256>}, {pipeline_mode = #tpu.pipeline_mode<synchronous>, transform_indices = @transform_1, window_bounds = array<i64: 4, 32>}, {pipeline_mode = #tpu.pipeline_mode<synchronous>, transform_indices = @transform_2, window_bounds = array<i64: 1, 32>}, {transform_indices = @transform_3, window_bounds = array<i64: 1, 256, 32>}]} {
    %c0 = arith.constant 0 : index
    %c0_0 = arith.constant 0 : index
    %c0_1 = arith.constant 0 : index
    %0 = vector.load %arg2[%c0, %c0_0, %c0_1] : memref<1x4x256xf32, #tpu.memory_space<vmem>>, vector<1x4x256xf32>
    %1 = vector.shape_cast %0 : vector<1x4x256xf32> to vector<4x256xf32>
    %c0_2 = arith.constant 0 : index
    %c0_3 = arith.constant 0 : index
    %2 = vector.load %arg3[%c0_2, %c0_3] : memref<4x32xf32, #tpu.memory_space<vmem>>, vector<4x32xf32>
    %cst = arith.constant dense<0.000000e+00> : vector<256x32xf32>
    %3 = tpu.matmul %1, %2, %cst {dimension_numbers = #tpu.dot_dimension_numbers<[0], [0], [1], [1], [0, 1, 1, 1], [], []>} : vector<4x256xf32>, vector<4x32xf32>, vector<256x32xf32> -> vector<256x32xf32>
    %c0_4 = arith.constant 0 : index
    %c0_5 = arith.constant 0 : index
    %4 = vector.load %arg4[%c0_4, %c0_5] : memref<1x32xf32, #tpu.memory_space<vmem>>, vector<1x32xf32>
    %5 = vector.broadcast %4 : vector<1x32xf32> to vector<256x32xf32>
    %6 = arith.addf %3, %5 : vector<256x32xf32>
    %c0_6 = arith.constant 0 : index
    %c0_7 = arith.constant 0 : index
    %c0_8 = arith.constant 0 : index
    %7 = vector.load %arg5[%c0_6, %c0_7, %c0_8] : memref<1x256x32xf32, #tpu.memory_space<vmem>>, vector<1x256x32xf32>
    %8 = vector.shape_cast %7 : vector<1x256x32xf32> to vector<256x32xf32>
    %9 = vector.shape_cast %6 : vector<256x32xf32> to vector<1x256x32xf32>
    tpu.vector_store %arg5[%c0_6, %c0_7, %c0_8], %9 {strides = array<i32>} : memref<1x256x32xf32, #tpu.memory_space<vmem>>, vector<1x256x32xf32>,
    return
  }
  func.func @transform_0(%arg0: i32, %arg1: i32) -> (i32, i32, i32) {
    %c0_i32 = arith.constant 0 : i32
    %c0_i32_0 = arith.constant 0 : i32
    return %arg0, %c0_i32, %arg1 : i32, i32, i32
  }
  func.func @transform_1(%arg0: i32, %arg1: i32) -> (i32, i32) {
    %c0_i32 = arith.constant 0 : i32
    %c0_i32_0 = arith.constant 0 : i32
    %c0_i32_1 = arith.constant 0 : i32
    return %c0_i32, %c0_i32_0 : i32, i32
  }
  func.func @transform_2(%arg0: i32, %arg1: i32) -> (i32, i32) {
    %c0_i32 = arith.constant 0 : i32
    %c0_i32_0 = arith.constant 0 : i32
    %c0_i32_1 = arith.constant 0 : i32
    return %c0_i32, %c0_i32_0 : i32, i32
  }
  func.func @transform_3(%arg0: i32, %arg1: i32) -> (i32, i32, i32) {
    %c0_i32 = arith.constant 0 : i32
    %c0_i32_0 = arith.constant 0 : i32
    return %arg0, %arg1, %c0_i32 : i32, i32, i32
  }
}

</mosaic_0001>

<bundles_post_ra>
// kernel: segformer_mask_mlp.1
= control target key start
LH: loop header
LB: loop body
LE: loop exit
PB: predicated region body
PF: predicated region fallthrough
CT: control target
= control target key end

     0   :  { %s934_s12 = smov 0   ;;  %s936_s13 = smov 0   ;;  %s1109_s0 = inlined_call_operand.vmem [shape: f32[2,4,256], index: 0, kind: input, shape index: {}]   ;;  %s1110_s1 = inlined_call_operand.vmem [shape: f32[4,32], index: 1, kind: input, shape index: {}]   ;;  %s1111_s2 = inlined_call_operand.vmem [shape: f32[1,32], index: 2, kind: input, shape index: {}]   ;;  %s1112_s3 = inlined_call_operand.vmem [shape: f32[2,256,32], index: 3, kind: output, shape index: {}]  }
   0x1   :  { %s938_s14 = smov 0  }
   0x2 LB: > { %s25_s15 = sadd.s32 1, %s908_s13  ;;  %p736_p0 = scmp.ge.s32.totalorder %s912_s14, 1  ;;  %s912_s14 = sphi %s938_s14, %s13_s14   ;;  %s908_s13 = sphi %s936_s13, %s1114_s13   ;;  %s904_s12 = sphi %s934_s12, %s1113_s12  }
   0x3   : > { %p27_p1 = scmp.ge.s32.totalorder %s25_s15, 2  ;;  %p158_p2 = scmp.lt.s32.totalorder %s912_s14, 3 }
   0x5   : > { %s1116_s15 = smov (%p27_p1, %s25_s15), 0  ;;  %p159_p3 = pnand %p736_p0, %p158_p2 }
   0x6   : > { %p191_p4 = scmp.lt.s32.totalorder (!%p159_p3), %s904_s12, 1 }
   0x7   : > { %162 = sbr.rel (%p159_p3) target bundleno = 463 (0x1cf), region = 32 }
   0xc   : > { %s1118_s12 = smov (!%p191_p4, %s904_s12), 1  ;;  %v211_v0 = vld [vmem:[%s1110_s1] sm:$0xf]  ;;  %vm383_vm0 = vcmask 1043456   ;;  %vm286_vm1 = vcmask 31744   ;;  %vm612_vm2 = vcmask 261120  }
   0xd   : > { %s777_s16 = sshll.u32 %s1118_s12, 3  ;;  %812 = vmatprep.subr.msk.mxu0 %vm383_vm0, %v211_v0  ;;  %862 = vmatprep.subr.msk.mxu1 %vm383_vm0, %v211_v0  ;;  %s778_s22 = sshll.u32 %s1118_s12, 8  ;;  %v997_v35 = vld [vmem:[%s1111_s2] ss:$0 sm:$0xff] }
   0xe   : > { %s198_s21 = scalar_lea.vmem %s1109_s0, %s777_s16  ;;  %813 = vmatpush3.msk.msra.mxu0 %vm383_vm0, %v211_v0  ;;  %863 = vmatpush3.msk.msra.mxu1 %vm383_vm0, %v211_v0  ;;  %s1002_s27 = scalar_lea.vmem %s1112_s3, %s778_s22 }
   0xf   : > { %v210_v1 = vld [vmem:[%s198_s21] sm:$0xff] }
  0x10   : > { %222 = vxpose.xlu0.b32.start.end [1/1] (short) %v210_v1, 128  ;;  %v220_v2 = vcombine.high %v210_v1, %v210_v1 }
  0x4d   : > { %254 = vxpose.xlu0.b32.start.end [1/1] (short) %v220_v2, 128 }
  0x8c   : > { %v238_v3 = vpop.trf.xlu0 }
  0x8d   : > { %814 = vmatprep.mubr.msk.f32.mxu0 %vm286_vm1, %v238_v3 }
  0x90   : > { %v239_v4 = vpop.trf.xlu0 }
  0x91   : > { %815 = vmatmul.mubr.msk.f32.vlgmr.msra.gmra.mxu0 %vm286_vm1, %v239_v4 }
  0x94   : > { %v240_v5 = vpop.trf.xlu0 }
  0x95   : > { %817 = vmatprep.mubr.msk.f32.mxu0 %vm286_vm1, %v240_v5 }
  0x98   : > { %v241_v6 = vpop.trf.xlu0 }
  0x99   : > { %818 = vmatmul.mubr.msk.f32.gmra.mxu0 %vm286_vm1, %v241_v6 }
  0x9c   : > { %v242_v7 = vpop.trf.xlu0 }
  0x9d   : > { %820 = vmatprep.mubr.msk.f32.mxu0 %vm286_vm1, %v242_v7 }
  0xa0   : > { %v243_v8 = vpop.trf.xlu0 }
  0xa1   : > { %821 = vmatmul.mubr.msk.f32.gmra.mxu0 %vm286_vm1, %v243_v8 }
  0xa4   : > { %v244_v9 = vpop.trf.xlu0 }
  0xa5   : > { %823 = vmatprep.mubr.msk.f32.mxu0 %vm286_vm1, %v244_v9 }
  0xa8   : > { %v245_v10 = vpop.trf.xlu0 }
  0xa9   : > { %824 = vmatmul.mubr.msk.f32.gmra.mxu0 %vm286_vm1, %v245_v10 }
  0xac   : > { %v246_v11 = vpop.trf.xlu0 }
  0xad   : > { %826 = vmatprep.mubr.msk.f32.mxu0 %vm286_vm1, %v246_v11 }
  0xb0   : > { %v247_v12 = vpop.trf.xlu0 }
  0xb1   : > { %827 = vmatmul.mubr.msk.f32.gmra.mxu0 %vm286_vm1, %v247_v12 }
  0xb4   : > { %v248_v13 = vpop.trf.xlu0 }
  0xb5   : > { %829 = vmatprep.mubr.msk.f32.mxu0 %vm286_vm1, %v248_v13 }
  0xb8   : > { %v249_v14 = vpop.trf.xlu0 }
  0xb9   : > { %830 = vmatmul.mubr.msk.f32.gmra.mxu0 %vm286_vm1, %v249_v14 }
  0xbc   : > { %v250_v15 = vpop.trf.xlu0 }
  0xbd   : > { %832 = vmatprep.mubr.msk.f32.mxu0 %vm286_vm1, %v250_v15 }
  0xc0   : > { %v251_v16 = vpop.trf.xlu0 }
  0xc1   : > { %833 = vmatmul.mubr.msk.f32.gmra.mxu0 %vm286_vm1, %v251_v16 }
  0xc4   : > { %v252_v17 = vpop.trf.xlu0 }
  0xc5   : > { %835 = vmatprep.mubr.msk.f32.mxu0 %vm286_vm1, %v252_v17 }
  0xc8   : > { %v253_v18 = vpop.trf.xlu0 }
  0xc9   : > { %836 = vmatmul.mubr.msk.f32.gmra.mxu0 %vm286_vm1, %v253_v18 }
  0xcc   : > { %v270_v19 = vpop.trf.xlu0 }
  0xcd   : > { %838 = vmatprep.mubr.msk.f32.mxu1 %vm286_vm1, %v270_v19 }
  0xd0   : > { %v271_v20 = vpop.trf.xlu0 }
  0xd1   : > { %839 = vmatmul.mubr.msk.f32.vlgmr.msra.gmra.mxu1 %vm286_vm1, %v271_v20 }
  0xd4   : > { %v272_v21 = vpop.trf.xlu0 }
  0xd5   : > { %841 = vmatprep.mubr.msk.f32.mxu1 %vm286_vm1, %v272_v21 }
  0xd8   : > { %v273_v22 = vpop.trf.xlu0 }
  0xd9   : > { %842 = vmatmul.mubr.msk.f32.gmra.mxu1 %vm286_vm1, %v273_v22 }
  0xdc   : > { %v274_v23 = vpop.trf.xlu0 }
  0xdd   : > { %844 = vmatprep.mubr.msk.f32.mxu1 %vm286_vm1, %v274_v23 }
  0xe0   : > { %v275_v24 = vpop.trf.xlu0 }
  0xe1   : > { %845 = vmatmul.mubr.msk.f32.gmra.mxu1 %vm286_vm1, %v275_v24 }
  0xe4   : > { %v276_v25 = vpop.trf.xlu0 }
  0xe5   : > { %847 = vmatprep.mubr.msk.f32.mxu1 %vm286_vm1, %v276_v25 }
  0xe8   : > { %v277_v26 = vpop.trf.xlu0 }
  0xe9   : > { %848 = vmatmul.mubr.msk.f32.gmra.mxu1 %vm286_vm1, %v277_v26 }
  0xec   : > { %v278_v27 = vpop.trf.xlu0 }
  0xed   : > { %850 = vmatprep.mubr.msk.f32.mxu1 %vm286_vm1, %v278_v27 }
  0xf0   : > { %v279_v28 = vpop.trf.xlu0 }
  0xf1   : > { %851 = vmatmul.mubr.msk.f32.gmra.mxu1 %vm286_vm1, %v279_v28 }
  0xf4   : > { %v280_v29 = vpop.trf.xlu0 }
  0xf5   : > { %853 = vmatprep.mubr.msk.f32.mxu1 %vm286_vm1, %v280_v29 }
  0xf8   : > { %v281_v30 = vpop.trf.xlu0 }
  0xf9   : > { %854 = vmatmul.mubr.msk.f32.gmra.mxu1 %vm286_vm1, %v281_v30 }
  0xfc   : > { %v282_v31 = vpop.trf.xlu0 }
  0xfd   : > { %856 = vmatprep.mubr.msk.f32.mxu1 %vm286_vm1, %v282_v31 }
 0x100   : > { %v283_v32 = vpop.trf.xlu0 }
 0x101   : > { %857 = vmatmul.mubr.msk.f32.gmra.mxu1 %vm286_vm1, %v283_v32 }
 0x104   : > { %v284_v33 = vpop.trf.xlu0 }
 0x105   : > { %859 = vmatprep.mubr.msk.f32.mxu1 %vm286_vm1, %v284_v33 }
 0x108   : > { %v285_v34 = vpop.trf.xlu0 }
 0x109   : > { %860 = vmatmul.mubr.msk.f32.gmra.mxu1 %vm286_vm1, %v285_v34 }
 0x151   : > { %v816_v36 = vpop.f32.mrf.mxu0 }
 0x152   : > { %v459_v37 = vadd.f32 %v816_v36, %v997_v35 }
 0x153   : > { %v453_v38 = vpop.f32.mrf.mxu0 }
 0x154   : > { %614 = vst.msk [vmem:[%s1002_s27 + $0x8] sm:$0xff] %vm612_vm2, %v459_v37  ;;  %v454_v39 = vadd.f32 %v997_v35, %v453_v38 }
 0x156   : > { %613 = vst.msk [vmem:[%s1002_s27] sm:$0xff] %vm612_vm2, %v454_v39 }
 0x159   : > { %v819_v40 = vpop.f32.mrf.mxu0 }
 0x15a   : > { %v469_v41 = vadd.f32 %v819_v40, %v997_v35 }
 0x15b   : > { %v463_v42 = vpop.f32.mrf.mxu0 }
 0x15c   : > { %616 = vst.msk [vmem:[%s1002_s27 + $0x18] sm:$0xff] %vm612_vm2, %v469_v41  ;;  %v464_v43 = vadd.f32 %v997_v35, %v463_v42 }
 0x15e   : > { %615 = vst.msk [vmem:[%s1002_s27 + $0x10] sm:$0xff] %vm612_vm2, %v464_v43 }
 0x161   : > { %v822_v44 = vpop.f32.mrf.mxu0 }
 0x162   : > { %v479_v45 = vadd.f32 %v822_v44, %v997_v35 }
 0x163   : > { %v473_v46 = vpop.f32.mrf.mxu0 }
 0x164   : > { %618 = vst.msk [vmem:[%s1002_s27 + $0x28] sm:$0xff] %vm612_vm2, %v479_v45  ;;  %v474_v47 = vadd.f32 %v997_v35, %v473_v46 }
 0x166   : > { %617 = vst.msk [vmem:[%s1002_s27 + $0x20] sm:$0xff] %vm612_vm2, %v474_v47 }
 0x169   : > { %v825_v48 = vpop.f32.mrf.mxu0 }
 0x16a   : > { %v489_v49 = vadd.f32 %v825_v48, %v997_v35 }
 0x16b   : > { %v483_v50 = vpop.f32.mrf.mxu0 }
 0x16c   : > { %620 = vst.msk [vmem:[%s1002_s27 + $0x38] sm:$0xff] %vm612_vm2, %v489_v49  ;;  %v484_v51 = vadd.f32 %v997_v35, %v483_v50 }
 0x16e   : > { %619 = vst.msk [vmem:[%s1002_s27 + $0x30] sm:$0xff] %vm612_vm2, %v484_v51 }
 0x171   : > { %v828_v52 = vpop.f32.mrf.mxu0 }
 0x172   : > { %v499_v53 = vadd.f32 %v828_v52, %v997_v35 }
 0x173   : > { %v493_v54 = vpop.f32.mrf.mxu0 }
 0x174   : > { %622 = vst.msk [vmem:[%s1002_s27 + $0x48] sm:$0xff] %vm612_vm2, %v499_v53  ;;  %v494_v55 = vadd.f32 %v997_v35, %v493_v54 }
 0x176   : > { %621 = vst.msk [vmem:[%s1002_s27 + $0x40] sm:$0xff] %vm612_vm2, %v494_v55 }
 0x179   : > { %v831_v56 = vpop.f32.mrf.mxu0 }
 0x17a   : > { %v509_v57 = vadd.f32 %v831_v56, %v997_v35 }
 0x17b   : > { %v503_v58 = vpop.f32.mrf.mxu0 }
 0x17c   : > { %624 = vst.msk [vmem:[%s1002_s27 + $0x58] sm:$0xff] %vm612_vm2, %v509_v57  ;;  %v504_v59 = vadd.f32 %v997_v35, %v503_v58 }
 0x17e   : > { %623 = vst.msk [vmem:[%s1002_s27 + $0x50] sm:$0xff] %vm612_vm2, %v504_v59 }
 0x181   : > { %v834_v60 = vpop.f32.mrf.mxu0 }
 0x182   : > { %v519_v61 = vadd.f32 %v834_v60, %v997_v35 }
 0x183   : > { %v513_v62 = vpop.f32.mrf.mxu0 }
 0x184   : > { %626 = vst.msk [vmem:[%s1002_s27 + $0x68] sm:$0xff] %vm612_vm2, %v519_v61  ;;  %v514_v63 = vadd.f32 %v997_v35, %v513_v62 }
 0x186   : > { %625 = vst.msk [vmem:[%s1002_s27 + $0x60] sm:$0xff] %vm612_vm2, %v514_v63 }
 0x189   : > { %v837_v0 = vpop.f32.mrf.mxu0 }
 0x18a   : > { %v529_v1 = vadd.f32 %v837_v0, %v997_v35 }
 0x18b   : > { %v523_v2 = vpop.f32.mrf.mxu0 }
 0x18c   : > { %628 = vst.msk [vmem:[%s1002_s27 + $0x78] sm:$0xff] %vm612_vm2, %v529_v1  ;;  %v524_v3 = vadd.f32 %v997_v35, %v523_v2 }
 0x18e   : > { %627 = vst.msk [vmem:[%s1002_s27 + $0x70] sm:$0xff] %vm612_vm2, %v524_v3 }
 0x191   : > { %v840_v4 = vpop.f32.mrf.mxu1 }
 0x192   : > { %v539_v5 = vadd.f32 %v840_v4, %v997_v35 }
 0x193   : > { %v533_v6 = vpop.f32.mrf.mxu1 }
 0x194   : > { %630 = vst.msk [vmem:[%s1002_s27 + $0x88] sm:$0xff] %vm612_vm2, %v539_v5  ;;  %v534_v7 = vadd.f32 %v997_v35, %v533_v6 }
 0x196   : > { %629 = vst.msk [vmem:[%s1002_s27 + $0x80] sm:$0xff] %vm612_vm2, %v534_v7 }
 0x199   : > { %v843_v8 = vpop.f32.mrf.mxu1 }
 0x19a   : > { %v549_v9 = vadd.f32 %v843_v8, %v997_v35 }
 0x19b   : > { %v543_v10 = vpop.f32.mrf.mxu1 }
 0x19c   : > { %632 = vst.msk [vmem:[%s1002_s27 + $0x98] sm:$0xff] %vm612_vm2, %v549_v9  ;;  %v544_v11 = vadd.f32 %v997_v35, %v543_v10 }
 0x19e   : > { %631 = vst.msk [vmem:[%s1002_s27 + $0x90] sm:$0xff] %vm612_vm2, %v544_v11 }
 0x1a1   : > { %v846_v12 = vpop.f32.mrf.mxu1 }
 0x1a2   : > { %v559_v13 = vadd.f32 %v846_v12, %v997_v35 }
 0x1a3   : > { %v553_v14 = vpop.f32.mrf.mxu1 }
 0x1a4   : > { %634 = vst.msk [vmem:[%s1002_s27 + $0xa8] sm:$0xff] %vm612_vm2, %v559_v13  ;;  %v554_v15 = vadd.f32 %v997_v35, %v553_v14 }
 0x1a6   : > { %633 = vst.msk [vmem:[%s1002_s27 + $0xa0] sm:$0xff] %vm612_vm2, %v554_v15 }
 0x1a9   : > { %v849_v16 = vpop.f32.mrf.mxu1 }
 0x1aa   : > { %v569_v17 = vadd.f32 %v849_v16, %v997_v35 }
 0x1ab   : > { %v563_v18 = vpop.f32.mrf.mxu1 }
 0x1ac   : > { %636 = vst.msk [vmem:[%s1002_s27 + $0xb8] sm:$0xff] %vm612_vm2, %v569_v17  ;;  %v564_v19 = vadd.f32 %v997_v35, %v563_v18 }
 0x1ae   : > { %635 = vst.msk [vmem:[%s1002_s27 + $0xb0] sm:$0xff] %vm612_vm2, %v564_v19 }
 0x1b1   : > { %v852_v20 = vpop.f32.mrf.mxu1 }
 0x1b2   : > { %v579_v21 = vadd.f32 %v852_v20, %v997_v35 }
 0x1b3   : > { %v573_v22 = vpop.f32.mrf.mxu1 }
 0x1b4   : > { %638 = vst.msk [vmem:[%s1002_s27 + $0xc8] sm:$0xff] %vm612_vm2, %v579_v21  ;;  %v574_v23 = vadd.f32 %v997_v35, %v573_v22 }
 0x1b6   : > { %637 = vst.msk [vmem:[%s1002_s27 + $0xc0] sm:$0xff] %vm612_vm2, %v574_v23 }
 0x1b9   : > { %v855_v24 = vpop.f32.mrf.mxu1 }
 0x1ba   : > { %v589_v25 = vadd.f32 %v855_v24, %v997_v35 }
 0x1bb   : > { %v583_v26 = vpop.f32.mrf.mxu1 }
 0x1bc   : > { %640 = vst.msk [vmem:[%s1002_s27 + $0xd8] sm:$0xff] %vm612_vm2, %v589_v25  ;;  %v584_v27 = vadd.f32 %v997_v35, %v583_v26 }
 0x1be   : > { %639 = vst.msk [vmem:[%s1002_s27 + $0xd0] sm:$0xff] %vm612_vm2, %v584_v27 }
 0x1c1   : > { %v858_v28 = vpop.f32.mrf.mxu1 }
 0x1c2   : > { %v599_v29 = vadd.f32 %v858_v28, %v997_v35 }
 0x1c3   : > { %v593_v30 = vpop.f32.mrf.mxu1 }
 0x1c4   : > { %642 = vst.msk [vmem:[%s1002_s27 + $0xe8] sm:$0xff] %vm612_vm2, %v599_v29  ;;  %v594_v31 = vadd.f32 %v997_v35, %v593_v30 }
 0x1c6   : > { %641 = vst.msk [vmem:[%s1002_s27 + $0xe0] sm:$0xff] %vm612_vm2, %v594_v31 }
 0x1c9   : > { %v861_v32 = vpop.f32.mrf.mxu1 }
 0x1ca   : > { %v609_v33 = vadd.f32 %v861_v32, %v997_v35 }
 0x1cb   : > { %v603_v34 = vpop.f32.mrf.mxu1 }
 0x1cc   : > { %644 = vst.msk [vmem:[%s1002_s27 + $0xf8] sm:$0xff] %vm612_vm2, %v609_v33  ;;  %v604_v36 = vadd.f32 %v997_v35, %v603_v34 }
 0x1ce   : > { %643 = vst.msk [vmem:[%s1002_s27 + $0xf0] sm:$0xff] %vm612_vm2, %v604_v36 }
 0x1cf PF: > { %s13_s14 = sadd.s32 1, %s912_s14   ;;  %s1113_s12 = smov %s908_s13 }
 0x1d0   : > { %p10_p5 = scmp.ge.s32.totalorder %s13_s14, 4   ;;  %s1114_s13 = smov %s1116_s15 }
 0x1d2   :  { %12 = sbr.rel (!%p10_p5) target bundleno = 2 (0x2), region = 62 }

</bundles_post_ra>
